<compile_context>
chip_gen: v6e
topology: v6e:2x2x1
jax: 0.10.0
libtpu: 0.0.40
codegen_flags: <defaults>
</compile_context>

<pallas_src>
import math

import jax
import jax.numpy as jnp
from jax import lax
from jax.experimental import pallas as pl
from jax.experimental.pallas import tpu as pltpu


# ---------------------------------------------------------------------------
# Kernels
# ---------------------------------------------------------------------------

def _noisy_linear_train_kernel(x_ref, wmu_ref, wsig_ref, eout_ref, ein_ref,
                               b_ref, o_ref, acc_ref):
    """One (i, j, k) step of y = x @ (mu + sigma * outer(eps_out, eps_in)).T + b."""
    k = pl.program_id(2)

    @pl.when(k == 0)
    def _():
        acc_ref[...] = jnp.zeros_like(acc_ref)

    # Factored-noise tile: (tn, 1) * (1, tk) -> (tn, tk)  (VPU broadcast mult).
    noise = eout_ref[...] * ein_ref[...]
    # Rebuild the noisy weight tile in f32 (exact for f32 or bf16 HBM params),
    # then hand the MXU a bf16 operand with f32 accumulation.
    w = (wmu_ref[...].astype(jnp.float32)
         + wsig_ref[...].astype(jnp.float32) * noise).astype(jnp.bfloat16)
    x = x_ref[...].astype(jnp.bfloat16)

    # F.linear contraction without transposing w: contract last dims of x and w
    # (transposed-RHS MXU feed -- no XLU transpose pass).
    acc_ref[...] += lax.dot_general(
        x, w,
        dimension_numbers=(((1,), (1,)), ((), ())),
        preferred_element_type=jnp.float32)

    @pl.when(k == pl.num_programs(2) - 1)
    def _():
        o_ref[...] = (acc_ref[...] + b_ref[...]).astype(o_ref.dtype)


def _noisy_linear_eval_kernel(x_ref, wmu_ref, b_ref, o_ref, acc_ref):
    """Eval path: y = x @ mu.T + bias_mu (no sigma / epsilon HBM traffic)."""
    k = pl.program_id(2)

    @pl.when(k == 0)
    def _():
        acc_ref[...] = jnp.zeros_like(acc_ref)

    acc_ref[...] += lax.dot_general(
        x_ref[...].astype(jnp.bfloat16),
        wmu_ref[...].astype(jnp.bfloat16),
        dimension_numbers=(((1,), (1,)), ((), ())),
        preferred_element_type=jnp.float32)

    @pl.when(k == pl.num_programs(2) - 1)
    def _():
        o_ref[...] = (acc_ref[...] + b_ref[...]).astype(o_ref.dtype)


# ---------------------------------------------------------------------------
# Wrapper helpers
# ---------------------------------------------------------------------------

def _round_up(x, m):
    return (x + m - 1) // m * m


def _choose_tile(padded, cap, align):
    """Largest multiple of `align` that divides `padded` and is <= cap."""
    cap = max(align, min(cap, padded))
    best = align
    t = align
    while t <= cap:
        if padded % t == 0:
            best = t
        t += align
    return best


def _pad2d(a, rows, cols):
    pr, pc = rows - a.shape[0], cols - a.shape[1]
    if pr or pc:
        a = jnp.pad(a, ((0, pr), (0, pc)))
    return a


def _vmem_bytes(tm, tn, tk, x_bytes, w_bytes, out_bytes, n_w_streams):
    return (2 * tm * tk * x_bytes                      # x, double-buffered
            + n_w_streams * 2 * tn * tk * w_bytes      # weight streams, 2 bufs
            + 2 * tm * tn * out_bytes                  # output, double-buffered
            + tm * tn * 4                              # f32 accumulator scratch
            + 2 * 4 * (2 * tn + tk))                   # eps / bias vectors


def _vmem_budget():
    """Physical VMEM per TensorCore with headroom for compiler scratch."""
    try:
        phys = int(pltpu.get_tpu_info().vmem_capacity_bytes)
    except Exception:   # conservative fallback (v7x size)
        phys = 64 << 20
    return int(phys * 0.80)   # ~51 MiB on v7x, ~102 MiB on v5e/v6e


# ---------------------------------------------------------------------------
# Wrapper
# ---------------------------------------------------------------------------

def noisy_linear(x, weight_mu, weight_sigma, eps_out, eps_in,
                 bias_mu, bias_sigma, bias_epsilon, training=True,
                 *, tm=256, tn=512, tk=2048):
    """NoisyLinear forward.

    x:                  (B, in_features)
    weight_mu/sigma:    (out_features, in_features)   f32 or bf16
    eps_out / eps_in:   (out_features,) / (in_features,)  factored noise
                        (weight_epsilon = outer(eps_out, eps_in))
    bias_*:             (out_features,)
    """
    B, in_f = x.shape
    out_f, in_f2 = weight_mu.shape
    assert in_f == in_f2

    # Lane/sublane-aligned problem sizes; tiles divide these exactly, so
    # padding never exceeds plain (8, 128) alignment and is skipped entirely
    # when shapes are already aligned (no over-rounded weight copies).
    Mp, Np, Kp = _round_up(B, 8), _round_up(out_f, 128), _round_up(in_f, 128)
    tm = _choose_tile(Mp, tm, 8)
    tn = _choose_tile(Np, tn, 128)
    tk = _choose_tile(Kp, tk, 128)

    # Keep both v7x TensorCores busy: need >= 2 blocks on the "parallel" axes.
    # Split N first (weights are still streamed exactly once when Mp//tm == 1).
    if (Mp // tm) * (Np // tn) < 2:
        if Np // 128 >= 2:
            tn = _choose_tile(Np, Np // 2, 128)
        elif Mp // 8 >= 2:
            tm = _choose_tile(Mp, Mp // 2, 8)

    x_bytes = jnp.dtype(x.dtype).itemsize
    w_bytes = jnp.dtype(weight_mu.dtype).itemsize
    out_bytes = x_bytes
    n_w = 2 if training else 1

    # Shrink tiles if the double-buffered working set would blow the
    # generation-aware VMEM budget (64 MiB/TC on v7x, 128 MiB on v5e/v6e).
    budget = _vmem_budget()
    est = _vmem_bytes(tm, tn, tk, x_bytes, w_bytes, out_bytes, n_w)
    while 2 * est > budget:
        if tk > 128:
            tk = _choose_tile(Kp, max(128, tk // 2), 128)
        elif tn > 128:
            tn = _choose_tile(Np, max(128, tn // 2), 128)
        elif tm > 8:
            tm = _choose_tile(Mp, max(8, tm // 2), 8)
        else:
            break
        est = _vmem_bytes(tm, tn, tk, x_bytes, w_bytes, out_bytes, n_w)

    grid = (Mp // tm, Np // tn, Kp // tk)
    vmem_limit = int(min(max(2 * est, 32 << 20), budget))

    # Zero-padding is exact for both the matmul and the bias add.
    xp = _pad2d(x, Mp, Kp)
    wmu = _pad2d(weight_mu, Np, Kp)
    bias = bias_mu + bias_sigma * bias_epsilon if training else bias_mu
    b = _pad2d(bias.astype(jnp.float32).reshape(1, out_f), 1, Np)

    x_spec = pl.BlockSpec((tm, tk), lambda i, j, k: (i, k))
    w_spec = pl.BlockSpec((tn, tk), lambda i, j, k: (j, k))
    b_spec = pl.BlockSpec((1, tn), lambda i, j, k: (0, j))
    out_spec = pl.BlockSpec((tm, tn), lambda i, j, k: (i, j))

    cparams = pltpu.CompilerParams(
        dimension_semantics=("parallel", "parallel", "arbitrary"),
        vmem_limit_bytes=vmem_limit)

    if training:
        wsig = _pad2d(weight_sigma, Np, Kp)
        eout = _pad2d(eps_out.astype(jnp.float32).reshape(out_f, 1), Np, 1)
        ein = _pad2d(eps_in.astype(jnp.float32).reshape(1, in_f), 1, Kp)

        out = pl.pallas_call(
            _noisy_linear_train_kernel,
            out_shape=jax.ShapeDtypeStruct((Mp, Np), x.dtype),
            grid_spec=pltpu.PrefetchScalarGridSpec(
                num_scalar_prefetch=0,
                grid=grid,
                in_specs=[
                    x_spec,
                    w_spec,                                          # weight_mu
                    w_spec,                                          # weight_sigma
                    pl.BlockSpec((tn, 1), lambda i, j, k: (j, 0)),   # eps_out
                    pl.BlockSpec((1, tk), lambda i, j, k: (0, k)),   # eps_in
                    b_spec,                                          # fused bias
                ],
                out_specs=out_spec,
                scratch_shapes=[pltpu.VMEM((tm, tn), jnp.float32)]),
            compiler_params=cparams,
        )(xp, wmu, wsig, eout, ein, b)
    else:
        out = pl.pallas_call(
            _noisy_linear_eval_kernel,
            out_shape=jax.ShapeDtypeStruct((Mp, Np), x.dtype),
            grid_spec=pltpu.PrefetchScalarGridSpec(
                num_scalar_prefetch=0,
                grid=grid,
                in_specs=[x_spec, w_spec, b_spec],
                out_specs=out_spec,
                scratch_shapes=[pltpu.VMEM((tm, tn), jnp.float32)]),
            compiler_params=cparams,
        )(xp, wmu, b)

    if Mp == B and Np == out_f:
        return out
    return out[:B, :out_f]


# ---------------------------------------------------------------------------
# Parameter / noise init (emulates reset_parameters() + reset_noise())
# ---------------------------------------------------------------------------

def _scale_noise(key, size):
    # torch: x = randn(size); x.sign() * x.abs().sqrt()
    x = jax.random.normal(key, (size,), dtype=jnp.float32)
    return jnp.sign(x) * jnp.sqrt(jnp.abs(x))


def init_noisy_linear_params(key, in_features, out_features, noise_std=0.5):
    k_wmu, k_bmu, k_ein, k_eout, k_beps = jax.random.split(key, 5)
    mu_range = 1.0 / math.sqrt(in_features)

    weight_mu = jax.random.uniform(
        k_wmu, (out_features, in_features), jnp.float32, -mu_range, mu_range)
    weight_sigma = jnp.full((out_features, in_features),
                            noise_std / math.sqrt(in_features), jnp.float32)
    bias_mu = jax.random.uniform(
        k_bmu, (out_features,), jnp.float32, -mu_range, mu_range)
    bias_sigma = jnp.full((out_features,),
                          noise_std / math.sqrt(out_features), jnp.float32)

    eps_in = _scale_noise(k_ein, in_features)
    eps_out = _scale_noise(k_eout, out_features)
    weight_epsilon = jnp.outer(eps_out, eps_in)      # only for the reference check
    bias_epsilon = _scale_noise(k_beps, out_features)

    return dict(weight_mu=weight_mu, weight_sigma=weight_sigma,
                eps_in=eps_in, eps_out=eps_out, weight_epsilon=weight_epsilon,
                bias_mu=bias_mu, bias_sigma=bias_sigma,
                bias_epsilon=bias_epsilon)


if __name__ == "__main__":
    key = jax.random.PRNGKey(0)
    k_params, k_x = jax.random.split(key)

    batch, in_features, out_features = 8, 32, 64
    params = init_noisy_linear_params(k_params, in_features, out_features,
                                      noise_std=0.5)
    x = jax.random.normal(k_x, (batch, in_features), dtype=jnp.float32)

    # Store the big matrices in bf16 once (init-time), halving per-call weight
    # HBM traffic; the kernel accepts f32 parameters unchanged as well.
    wmu_bf = params["weight_mu"].astype(jnp.bfloat16)
    wsig_bf = params["weight_sigma"].astype(jnp.bfloat16)

    # Training-mode forward (noisy weights) via the Pallas kernel.
    y = noisy_linear(x, wmu_bf, wsig_bf,
                     params["eps_out"], params["eps_in"],
                     params["bias_mu"], params["bias_sigma"],
                     params["bias_epsilon"], training=True)
    y = jax.block_until_ready(y)

    # Reference (exact f32 PyTorch semantics).  Tolerance is loose because the
    # kernel stores weights in bf16 and feeds the MXU bf16 (f32 accumulation).
    w_ref = params["weight_mu"] + params["weight_sigma"] * params["weight_epsilon"]
    b_ref = params["bias_mu"] + params["bias_sigma"] * params["bias_epsilon"]
    y_ref = x @ w_ref.T + b_ref
    assert jnp.allclose(y, y_ref, atol=5e-2, rtol=5e-2), "train-mode mismatch"

    # Eval-mode forward (mean parameters only; dedicated mu-only kernel).
    y_eval = noisy_linear(x, wmu_bf, wsig_bf,
                          params["eps_out"], params["eps_in"],
                          params["bias_mu"], params["bias_sigma"],
                          params["bias_epsilon"], training=False)
    y_eval = jax.block_until_ready(y_eval)
    y_eval_ref = x @ params["weight_mu"].T + params["bias_mu"]
    assert jnp.allclose(y_eval, y_eval_ref, atol=5e-2, rtol=5e-2), "eval-mode mismatch"

    print("KERNEL_OK")
</pallas_src>

<mosaic_0001>
module attributes {stable_mosaic.version = 11 : i64} {
  func.func @_noisy_linear_train_kernel(%arg0: i32, %arg1: i32, %arg2: i32, %arg3: memref<8x128xf32, #tpu.memory_space<vmem>>, %arg4: memref<128x128xbf16, #tpu.memory_space<vmem>>, %arg5: memref<128x128xbf16, #tpu.memory_space<vmem>>, %arg6: memref<128x1xf32, #tpu.memory_space<vmem>>, %arg7: memref<1x128xf32, #tpu.memory_space<vmem>>, %arg8: memref<1x128xf32, #tpu.memory_space<vmem>>, %arg9: memref<8x128xf32, #tpu.memory_space<vmem>>, %arg10: memref<8x128xf32, #tpu.memory_space<vmem>>) attributes {dimension_semantics = [#tpu.dimension_semantics<parallel>, #tpu.dimension_semantics<parallel>, #tpu.dimension_semantics<arbitrary>], iteration_bounds = array<i64: 1, 1, 1>, scalar_prefetch = 0 : i64, scratch_operands = 1 : i64, tpu.core_type = #tpu.core_type<tc>, window_params = [{transform_indices = @transform_0, window_bounds = array<i64: 8, 128>}, {transform_indices = @transform_1, window_bounds = array<i64: 128, 128>}, {transform_indices = @transform_2, window_bounds = array<i64: 128, 128>}, {transform_indices = @transform_3, window_bounds = array<i64: 128, 1>}, {transform_indices = @transform_4, window_bounds = array<i64: 1, 128>}, {transform_indices = @transform_5, window_bounds = array<i64: 1, 128>}, {transform_indices = @transform_6, window_bounds = array<i64: 8, 128>}]} {
    %c0_i32 = arith.constant 0 : i32
    %0 = arith.cmpi eq, %arg2, %c0_i32 : i32
    %1 = arith.extui %0 : i1 to i32
    %c0_i32_0 = arith.constant 0 : i32
    %2 = arith.cmpi ne, %1, %c0_i32_0 : i32
    scf.if %2 {
      %cst_16 = arith.constant 0.000000e+00 : f32
      %24 = vector.broadcast %cst_16 : f32 to vector<8x128xf32>
      %c0_17 = arith.constant 0 : index
      %c0_18 = arith.constant 0 : index
      %25 = vector.load %arg10[%c0_17, %c0_18] : memref<8x128xf32, #tpu.memory_space<vmem>>, vector<8x128xf32>
      tpu.vector_store %arg10[%c0_17, %c0_18], %24 {strides = array<i32>} : memref<8x128xf32, #tpu.memory_space<vmem>>, vector<8x128xf32>,
    } else {
    }
    %c0 = arith.constant 0 : index
    %c0_1 = arith.constant 0 : index
    %3 = vector.load %arg6[%c0, %c0_1] : memref<128x1xf32, #tpu.memory_space<vmem>>, vector<128x1xf32>
    %c0_2 = arith.constant 0 : index
    %c0_3 = arith.constant 0 : index
    %4 = vector.load %arg7[%c0_2, %c0_3] : memref<1x128xf32, #tpu.memory_space<vmem>>, vector<1x128xf32>
    %5 = vector.broadcast %3 : vector<128x1xf32> to vector<128x128xf32>
    %6 = vector.broadcast %4 : vector<1x128xf32> to vector<128x128xf32>
    %7 = arith.mulf %5, %6 : vector<128x128xf32>
    %c0_4 = arith.constant 0 : index
    %c0_5 = arith.constant 0 : index
    %8 = vector.load %arg4[%c0_4, %c0_5] : memref<128x128xbf16, #tpu.memory_space<vmem>>, vector<128x128xbf16>
    %9 = arith.extf %8 : vector<128x128xbf16> to vector<128x128xf32>
    %c0_6 = arith.constant 0 : index
    %c0_7 = arith.constant 0 : index
    %10 = vector.load %arg5[%c0_6, %c0_7] : memref<128x128xbf16, #tpu.memory_space<vmem>>, vector<128x128xbf16>
    %11 = arith.extf %10 : vector<128x128xbf16> to vector<128x128xf32>
    %12 = arith.mulf %11, %7 : vector<128x128xf32>
    %13 = arith.addf %9, %12 : vector<128x128xf32>
    %14 = arith.truncf %13 : vector<128x128xf32> to vector<128x128xbf16>
    %c0_8 = arith.constant 0 : index
    %c0_9 = arith.constant 0 : index
    %15 = vector.load %arg3[%c0_8, %c0_9] : memref<8x128xf32, #tpu.memory_space<vmem>>, vector<8x128xf32>
    %16 = arith.truncf %15 : vector<8x128xf32> to vector<8x128xbf16>
    %c0_10 = arith.constant 0 : index
    %c0_11 = arith.constant 0 : index
    %17 = vector.load %arg10[%c0_10, %c0_11] : memref<8x128xf32, #tpu.memory_space<vmem>>, vector<8x128xf32>
    %cst = arith.constant dense<0.000000e+00> : vector<8x128xf32>
    %18 = tpu.matmul %16, %14, %cst {dimension_numbers = #tpu.dot_dimension_numbers<[1], [1], [0], [0], [0, 0, 1, 0], [], []>} : vector<8x128xbf16>, vector<128x128xbf16>, vector<8x128xf32> -> vector<8x128xf32>
    %19 = arith.addf %17, %18 : vector<8x128xf32>
    %c0_12 = arith.constant 0 : index
    %c0_13 = arith.constant 0 : index
    %20 = vector.load %arg10[%c0_12, %c0_13] : memref<8x128xf32, #tpu.memory_space<vmem>>, vector<8x128xf32>
    tpu.vector_store %arg10[%c0_12, %c0_13], %19 {strides = array<i32>} : memref<8x128xf32, #tpu.memory_space<vmem>>, vector<8x128xf32>,
    %c0_i32_14 = arith.constant 0 : i32
    %21 = arith.cmpi eq, %arg2, %c0_i32_14 : i32
    %22 = arith.extui %21 : i1 to i32
    %c0_i32_15 = arith.constant 0 : i32
    %23 = arith.cmpi ne, %22, %c0_i32_15 : i32
    scf.if %23 {
      %c0_16 = arith.constant 0 : index
      %c0_17 = arith.constant 0 : index
      %24 = vector.load %arg10[%c0_16, %c0_17] : memref<8x128xf32, #tpu.memory_space<vmem>>, vector<8x128xf32>
      %c0_18 = arith.constant 0 : index
      %c0_19 = arith.constant 0 : index
      %25 = vector.load %arg8[%c0_18, %c0_19] : memref<1x128xf32, #tpu.memory_space<vmem>>, vector<1x128xf32>
      %26 = vector.broadcast %25 : vector<1x128xf32> to vector<8x128xf32>
      %27 = arith.addf %24, %26 : vector<8x128xf32>
      %c0_20 = arith.constant 0 : index
      %c0_21 = arith.constant 0 : index
      %28 = vector.load %arg9[%c0_20, %c0_21] : memref<8x128xf32, #tpu.memory_space<vmem>>, vector<8x128xf32>
      tpu.vector_store %arg9[%c0_20, %c0_21], %27 {strides = array<i32>} : memref<8x128xf32, #tpu.memory_space<vmem>>, vector<8x128xf32>,
    } else {
    }
    return
  }
  func.func @transform_0(%arg0: i32, %arg1: i32, %arg2: i32) -> (i32, i32) {
    %c0_i32 = arith.constant 0 : i32
    return %arg0, %arg2 : i32, i32
  }
  func.func @transform_1(%arg0: i32, %arg1: i32, %arg2: i32) -> (i32, i32) {
    %c0_i32 = arith.constant 0 : i32
    return %arg1, %arg2 : i32, i32
  }
  func.func @transform_2(%arg0: i32, %arg1: i32, %arg2: i32) -> (i32, i32) {
    %c0_i32 = arith.constant 0 : i32
    return %arg1, %arg2 : i32, i32
  }
  func.func @transform_3(%arg0: i32, %arg1: i32, %arg2: i32) -> (i32, i32) {
    %c0_i32 = arith.constant 0 : i32
    %c0_i32_0 = arith.constant 0 : i32
    return %arg1, %c0_i32 : i32, i32
  }
  func.func @transform_4(%arg0: i32, %arg1: i32, %arg2: i32) -> (i32, i32) {
    %c0_i32 = arith.constant 0 : i32
    %c0_i32_0 = arith.constant 0 : i32
    return %c0_i32, %arg2 : i32, i32
  }
  func.func @transform_5(%arg0: i32, %arg1: i32, %arg2: i32) -> (i32, i32) {
    %c0_i32 = arith.constant 0 : i32
    %c0_i32_0 = arith.constant 0 : i32
    return %c0_i32, %arg1 : i32, i32
  }
  func.func @transform_6(%arg0: i32, %arg1: i32, %arg2: i32) -> (i32, i32) {
    %c0_i32 = arith.constant 0 : i32
    return %arg0, %arg1 : i32, i32
  }
}

</mosaic_0001>

<bundles_post_ra>
// kernel: tpu_custom_call.1
= control target key start
LH: loop header
LB: loop body
LE: loop exit
PB: predicated region body
PF: predicated region fallthrough
CT: control target
= control target key end

     0   :  { %11 = vsyncpa [#allocation4], 0  ;;  %s673_s0 = inlined_call_operand.hbm [shape: f32[8,128], index: 0, kind: input, shape index: {}]   ;;  %s674_s1 = inlined_call_operand.vmem [shape: bf16[128,128], index: 1, kind: input, shape index: {}]   ;;  %s675_s2 = inlined_call_operand.vmem [shape: bf16[128,128], index: 2, kind: input, shape index: {}]   ;;  %s676_s3 = inlined_call_operand.vmem [shape: f32[128,1], index: 3, kind: input, shape index: {}]   ;;  %s677_s4 = inlined_call_operand.vmem [shape: f32[1,128], index: 4, kind: input, shape index: {}]   ;;  %s678_s5 = inlined_call_operand.vmem [shape: f32[1,128], index: 5, kind: input, shape index: {}]   ;;  %s679_s6 = inlined_call_operand.hbm [shape: f32[8,128], index: 6, kind: output, shape index: {}]  }
   0x1   :  { %12 = vsyncpa [#allocation5], 0  ;;  %s498_s21 = smov [#allocation3]  }
   0x2   :  { %s19_s22 = sshll.u32 %s498_s21, 4  ;;  %s20_s22 = int_to_ptr.vmem [resolvable:$true] %s19_s22 }
   0x3   :  { %s462_s23 = scalar_lea.vmem %s20_s22, 128  ;;  %p467_p1 = scmp.lt.s32.totalorder %s20_s22, %s20_s22 }
   0x4   :  { %p463_p0 = scmp.ne.s32.totalorder %s20_s22, %s462_s23  ;;  %p468_p2 = scmp.lt.s32.totalorder %s462_s23, %s462_s23 }
   0x6   :  { %p469_p3 = por %p468_p2, %p467_p1 }
   0x8   :  { %p470_p4 = pnand %p469_p3, %p463_p0 }
   0xa   :  { %473 = shalt.err (!%p470_p4)
}
   0xb   :  { %22 = dma.hbm_to_vmem [thread:$0]  %s673_s0, 128, %s20_s22, [#allocation4]  }
   0xc   :  { %494 = dma.done.wait [#allocation4], 128  }
   0xd   :  { %495 = vsyncadd [#allocation4], 4294967168  ;;  %v499_v0 = vmov 0   ;;  %v56_v1 = vld [vmem:[%s676_s3 + $0x70] sm:$0xff]  ;;  %v54_v2 = vld [vmem:[%s676_s3 + $0x60] sm:$0xff]  ;;  %v500_v9 = vmov 0.0  }
   0xe   :  { %453 = vset.pattern.permute.xlu1 %v499_v0  ;;  %452 = vset.pattern.permute.xlu0 %v499_v0  ;;  %v57_v3 = vld [vmem:[%s676_s3 + $0x78] sm:$0xff]  ;;  %v55_v4 = vld [vmem:[%s676_s3 + $0x68] sm:$0xff]  ;;  %v52_v6 = vld [vmem:[%s676_s3 + $0x50] sm:$0xff]  ;;  %vm501_vm0 = vmmov 0   ;;  %s502_s14 = smov [#allocation6]  }
   0xf   :  { %131 = vperm.xlu0 %452, %v56_v1   ;;  %121 = vperm.xlu1 %453, %v54_v2   ;;  %v53_v5 = vld [vmem:[%s676_s3 + $0x58] sm:$0xff]  ;;  %v51_v7 = vld [vmem:[%s676_s3 + $0x48] sm:$0xff]  ;;  %v50_v8 = vld [vmem:[%s676_s3 + $0x40] sm:$0xff] }
  0x10   :  { %427 = vmatprep.subr.bf16.mxu0 %v500_v9  ;;  %v49_v10 = vld [vmem:[%s676_s3 + $0x38] sm:$0xff]  ;;  %v48_v11 = vld [vmem:[%s676_s3 + $0x30] sm:$0xff]  ;;  %v47_v12 = vld [vmem:[%s676_s3 + $0x28] sm:$0xff]  ;;  %443 = vmatprep.mubr.msk.bf16.mxu0 %vm501_vm0, %v500_v9 }
  0x11   :  { %v46_v13 = vld [vmem:[%s676_s3 + $0x20] sm:$0xff]  ;;  %v45_v14 = vld [vmem:[%s676_s3 + $0x18] sm:$0xff]  ;;  %v44_v15 = vld [vmem:[%s676_s3 + $0x10] sm:$0xff] }
  0x12   :  { %v43_v16 = vld [vmem:[%s676_s3 + $0x8] sm:$0xff]  ;;  %v42_v17 = vld [vmem:[%s676_s3] sm:$0xff]  ;;  %v417_v19 = vld [vmem:[%s675_s2 + $0x38] sm:$0xff]  }
  0x13   :  { %136 = vperm.xlu0 %452, %v57_v3   ;;  %126 = vperm.xlu1 %453, %v55_v4   ;;  %v594_v18 = vld [vmem:[%s677_s4] ss:$0 sm:$0xff]  ;;  %v402_v22 = vunpack.c.l.bf16 %v417_v19  ;;  %v410_v24 = vld [vmem:[%s674_s1 + $0x38] sm:$0xff]   ;;  %v416_v25 = vld [vmem:[%s675_s2 + $0x30] sm:$0xff]   ;;  %v403_v26 = vunpack.c.h.bf16 %v417_v19  ;;  %s329_s4 = sshll.u32 %s502_s14, 4  ;;  %s330_s4 = int_to_ptr.vmem [resolvable:$true] %s329_s4 }
  0x14   :  { %v370_v30 = vunpack.c.l.bf16 %v410_v24  ;;  %v371_v31 = vunpack.c.h.bf16 %v410_v24  ;;  %v398_v32 = vunpack.c.l.bf16 %v416_v25  ;;  %v409_v34 = vld [vmem:[%s674_s1 + $0x30] sm:$0xff]   ;;  %v399_v37 = vunpack.c.h.bf16 %v416_v25  ;;  %v415_v45 = vld [vmem:[%s675_s2 + $0x28] sm:$0xff]   ;;  %v414_v60 = vld [vmem:[%s675_s2 + $0x20] sm:$0xff]   ;;  %s474_s15 = scalar_lea.vmem %s330_s4, 128  ;;  %p479_p6 = scmp.lt.s32.totalorder %s330_s4, %s330_s4 }
  0x15   :  { %v366_v41 = vunpack.c.l.bf16 %v409_v34  ;;  %v367_v43 = vunpack.c.h.bf16 %v409_v34  ;;  %v395_v49 = vunpack.c.h.bf16 %v415_v45  ;;  %v394_v50 = vunpack.c.l.bf16 %v415_v45  ;;  %v408_v53 = vld [vmem:[%s674_s1 + $0x28] sm:$0xff]   ;;  %v407_v4 = vld [vmem:[%s674_s1 + $0x20] sm:$0xff]   ;;  %p475_p5 = scmp.ne.s32.totalorder %s330_s4, %s474_s15  ;;  %p480_p7 = scmp.lt.s32.totalorder %s474_s15, %s474_s15 }
  0x16   :  { %v363_v56 = vunpack.c.h.bf16 %v408_v53  ;;  %v362_v58 = vunpack.c.l.bf16 %v408_v53  ;;  %v391_v0 = vunpack.c.h.bf16 %v414_v60  ;;  %v390_v1 = vunpack.c.l.bf16 %v414_v60 }
  0x17   :  { %116 = vperm.xlu1 %453, %v53_v5   ;;  %111 = vperm.xlu0 %452, %v52_v6   ;;  %p481_p8 = por %p480_p7, %p479_p6 }
  0x19   :  { %p482_p9 = pnand %p481_p8, %p475_p5 }
  0x1b   :  { %106 = vperm.xlu1 %453, %v51_v7   ;;  %101 = vperm.xlu0 %452, %v50_v8   ;;  %v359_v7 = vunpack.c.h.bf16 %v407_v4 }
  0x1f   :  { %96 = vperm.xlu1 %453, %v49_v10   ;;  %91 = vperm.xlu0 %452, %v48_v11   ;;  %v358_v10 = vunpack.c.l.bf16 %v407_v4 }
  0x23   :  { %86 = vperm.xlu1 %453, %v47_v12   ;;  %81 = vperm.xlu0 %452, %v46_v13   ;;  %v413_v12 = vld [vmem:[%s675_s2 + $0x18] sm:$0xff]  }
  0x27   :  { %76 = vperm.xlu1 %453, %v45_v14   ;;  %71 = vperm.xlu0 %452, %v44_v15  }
  0x2b   :  { %66 = vperm.xlu1 %453, %v43_v16   ;;  %61 = vperm.xlu0 %452, %v42_v17   ;;  %v387_v16 = vunpack.c.h.bf16 %v413_v12  ;;  %v386_v17 = vunpack.c.l.bf16 %v413_v12 }
  0x8a   :  { %v132_v20 = vpop.permute.xlu0 %131  ;;  %v122_v21 = vpop.permute.xlu1 %121 }
  0x8b   :  { %v159_v23 = vmul.f32 %v594_v18, %v132_v20  ;;  %v157_v35 = vmul.f32 %v594_v18, %v122_v21  ;;  %v406_v21 = vld [vmem:[%s674_s1 + $0x18] sm:$0xff]  }
  0x8c   :  { %v355_v24 = vunpack.c.h.bf16 %v406_v21 }
  0x8d   :  { %v239_v28 = vmul.f32 %v402_v22, %v159_v23  ;;  %v237_v42 = vmul.f32 %v398_v32, %v157_v35 }
  0x8e   :  { %v137_v27 = vpop.permute.xlu0 %136  ;;  %v127_v33 = vpop.permute.xlu1 %126 }
  0x8f   :  { %v160_v29 = vmul.f32 %v594_v18, %v137_v27  ;;  %v158_v38 = vmul.f32 %v594_v18, %v127_v33  ;;  %v255_v39 = vadd.f32 %v370_v30, %v239_v28  ;;  %v253_v51 = vadd.f32 %v366_v41, %v237_v42  ;;  %v412_v28 = vld [vmem:[%s675_s2 + $0x10] sm:$0xff]  }
  0x90   :  { %v383_v32 = vunpack.c.h.bf16 %v412_v28  ;;  %v382_v33 = vunpack.c.l.bf16 %v412_v28 }
  0x91   :  { %v240_v36 = vmul.f32 %v403_v26, %v160_v29  ;;  %v238_v44 = vmul.f32 %v399_v37, %v158_v38  ;;  %v354_v26 = vunpack.c.l.bf16 %v406_v21 }
  0x92   :  { %v117_v47 = vpop.permute.xlu1 %116  ;;  %v112_v48 = vpop.permute.xlu0 %111 }
  0x93   :  { %v256_v40 = vadd.f32 %v371_v31, %v240_v36  ;;  %v254_v52 = vadd.f32 %v367_v43, %v238_v44  ;;  %v156_v54 = vmul.f32 %v594_v18, %v117_v47  ;;  %v155_v55 = vmul.f32 %v594_v18, %v112_v48  ;;  %v405_v36 = vld [vmem:[%s674_s1 + $0x10] sm:$0xff]   ;;  %v411_v43 = vld [vmem:[%s675_s2 + $0x8] sm:$0xff]  }
  0x94   :  { %v350_v41 = vunpack.c.l.bf16 %v405_v36  ;;  %v379_v47 = vunpack.c.h.bf16 %v411_v43  ;;  %v378_v48 = vunpack.c.l.bf16 %v411_v43 }
  0x95   :  { %v264_v46 = vpack.c.bf16 %v256_v40, %v255_v39  ;;  %v236_v57 = vmul.f32 %v395_v49, %v156_v54  ;;  %v235_v59 = vmul.f32 %v394_v50, %v155_v55  ;;  %v263_v61 = vpack.c.bf16 %v254_v52, %v253_v51  ;;  %v404_v51 = vld [vmem:[%s674_s1 + $0x8] sm:$0xff]  }
  0x96   :  { %v107_v62 = vpop.permute.xlu1 %106  ;;  %v102_v63 = vpop.permute.xlu0 %101  ;;  %v351_v39 = vunpack.c.h.bf16 %v405_v36  ;;  %v347_v54 = vunpack.c.h.bf16 %v404_v51 }
  0x97   :  { %428 = vmatpush3.bf16.xpose.msra.mxu0 %v264_v46  ;;  %v252_v2 = vadd.f32 %v363_v56, %v236_v57  ;;  %v251_v3 = vadd.f32 %v362_v58, %v235_v59  ;;  %v154_v5 = vmul.f32 %v594_v18, %v107_v62  ;;  %v153_v6 = vmul.f32 %v594_v18, %v102_v63  ;;  %v373_v58 = vld [vmem:[%s675_s2] sm:$0xff]  }
  0x98   :  { %429 = vmatprep.subr.bf16.mxu0 %v500_v9  ;;  %v346_v56 = vunpack.c.l.bf16 %v404_v51  ;;  %v375_v62 = vunpack.c.h.bf16 %v373_v58  ;;  %v374_v63 = vunpack.c.l.bf16 %v373_v58 }
  0x99   :  { %v234_v8 = vmul.f32 %v391_v0, %v154_v5  ;;  %v233_v11 = vmul.f32 %v390_v1, %v153_v6  ;;  %v262_v13 = vpack.c.bf16 %v252_v2, %v251_v3  ;;  %v341_v2 = vld [vmem:[%s674_s1] sm:$0xff]  }
  0x9a   :  { %v97_v14 = vpop.permute.xlu1 %96  ;;  %v92_v15 = vpop.permute.xlu0 %91  ;;  %v343_v5 = vunpack.c.h.bf16 %v341_v2 }
  0x9b   :  { %v250_v19 = vadd.f32 %v359_v7, %v234_v8  ;;  %v249_v20 = vadd.f32 %v358_v10, %v233_v11  ;;  %v152_v22 = vmul.f32 %v594_v18, %v97_v14  ;;  %v151_v23 = vmul.f32 %v594_v18, %v92_v15  ;;  %v265_v14 = vld [vmem:[#allocation3] sm:$0xff] }
  0x9c   :  { %v342_v7 = vunpack.c.l.bf16 %v341_v2  ;;  %v266_v15 = vpack.c.bf16 %v265_v14, %v265_v14 }
  0x9d   :  { %v232_v25 = vmul.f32 %v387_v16, %v152_v22  ;;  %v231_v27 = vmul.f32 %v386_v17, %v151_v23  ;;  %v261_v29 = vpack.c.bf16 %v250_v19, %v249_v20  ;;  %v339_v16 = vld [vmem:[%s678_s5] ss:$0 sm:$0xff] }
  0x9e   :  { %v87_v30 = vpop.permute.xlu1 %86  ;;  %v82_v31 = vpop.permute.xlu0 %81 }
  0x9f   :  { %430 = vmatpush3.bf16.xpose.msra.mxu0 %v263_v61  ;;  %v248_v34 = vadd.f32 %v355_v24, %v232_v25  ;;  %v247_v35 = vadd.f32 %v354_v26, %v231_v27  ;;  %v150_v37 = vmul.f32 %v594_v18, %v87_v30  ;;  %v149_v38 = vmul.f32 %v594_v18, %v82_v31 }
  0xa0   :  { %431 = vmatprep.subr.bf16.mxu0 %v500_v9 }
  0xa1   :  { %v230_v40 = vmul.f32 %v383_v32, %v150_v37  ;;  %v229_v42 = vmul.f32 %v382_v33, %v149_v38  ;;  %v260_v44 = vpack.c.bf16 %v248_v34, %v247_v35 }
  0xa2   :  { %v77_v45 = vpop.permute.xlu1 %76  ;;  %v72_v46 = vpop.permute.xlu0 %71 }
  0xa3   :  { %v246_v49 = vadd.f32 %v351_v39, %v230_v40  ;;  %v245_v50 = vadd.f32 %v350_v41, %v229_v42  ;;  %v148_v52 = vmul.f32 %v594_v18, %v77_v45  ;;  %v147_v53 = vmul.f32 %v594_v18, %v72_v46 }
  0xa5   :  { %v228_v55 = vmul.f32 %v379_v47, %v148_v52  ;;  %v227_v57 = vmul.f32 %v378_v48, %v147_v53  ;;  %v259_v59 = vpack.c.bf16 %v246_v49, %v245_v50 }
  0xa6   :  { %v67_v60 = vpop.permute.xlu1 %66  ;;  %v62_v61 = vpop.permute.xlu0 %61 }
  0xa7   :  { %432 = vmatpush3.bf16.xpose.msra.mxu0 %v262_v13  ;;  %v244_v0 = vadd.f32 %v347_v54, %v228_v55  ;;  %v243_v1 = vadd.f32 %v346_v56, %v227_v57  ;;  %v146_v3 = vmul.f32 %v594_v18, %v67_v60  ;;  %v145_v4 = vmul.f32 %v594_v18, %v62_v61 }
  0xa8   :  { %433 = vmatprep.subr.bf16.mxu0 %v500_v9 }
  0xa9   :  { %v226_v6 = vmul.f32 %v375_v62, %v146_v3  ;;  %v225_v8 = vmul.f32 %v374_v63, %v145_v4  ;;  %v258_v10 = vpack.c.bf16 %v244_v0, %v243_v1 }
  0xab   :  { %v242_v11 = vadd.f32 %v343_v5, %v226_v6  ;;  %v241_v12 = vadd.f32 %v342_v7, %v225_v8 }
  0xad   :  { %v257_v13 = vpack.c.bf16 %v242_v11, %v241_v12 }
  0xaf   :  { %434 = vmatpush3.bf16.xpose.msra.mxu0 %v261_v29 }
  0xb0   :  { %435 = vmatprep.subr.bf16.mxu0 %v500_v9 }
  0xb7   :  { %436 = vmatpush3.bf16.xpose.msra.mxu0 %v260_v44 }
  0xb8   :  { %437 = vmatprep.subr.bf16.mxu0 %v500_v9 }
  0xbf   :  { %438 = vmatpush3.bf16.xpose.msra.mxu0 %v259_v59 }
  0xc0   :  { %439 = vmatprep.subr.bf16.mxu0 %v500_v9 }
  0xc7   :  { %440 = vmatpush3.bf16.xpose.msra.mxu0 %v258_v10 }
  0xc8   :  { %441 = vmatprep.subr.bf16.mxu0 %v500_v9 }
  0xcf   :  { %442 = vmatpush3.bf16.xpose.msra.mxu0 %v257_v13 }
  0xd6   :  { %444 = vmatmul.mubr.bf16.vlgmr.msra.gmra.mxu0 %v266_v15 }
 0x196   :  { %v302_v18 = vpop.f32.mrf.mxu0 }
 0x197   :  { %v321_v17 = vadd.f32 %v339_v16, %v302_v18 }
 0x198   :  { %v445_v19 = vpop.f32.mrf.mxu0 }
 0x199   :  { %322 = vst [vmem:[#allocation6] sm:$0xff] %v321_v17 }
 0x19a   :  { %v305_v20 = vpop.f32.mrf.mxu0 }
 0x19b   :  { %485 = shalt.err (!%p482_p9)
}
 0x19c   :  { %332 = dma.vmem_to_hbm [thread:$0]  %s330_s4, 128, %s679_s6, [#allocation5]   ;;  %v446_v9 = vpop.f32.mrf.mxu0 }
 0x19d   :  { %496 = dma.done.wait [#allocation5], 128  }
 0x19e   :  { %497 = vsyncadd [#allocation5], 4294967168 }
 0x19f   :  { %336 = vsyncpa [#allocation4], 1 }
 0x1a0   :  { %337 = vsyncpa [#allocation5], 1 }

</bundles_post_ra>
